<compile_context>
chip_gen: v7x
topology: tpu7x:2x2x1
jax: 0.10.0
libtpu: 0.0.40
codegen_flags: <defaults>
</compile_context>

<pallas_src>
import jax
import jax.numpy as jnp
from jax.experimental import pallas as pl
from jax.experimental.pallas import tpu as pltpu


def _ddpm_kernel(s0_ref, s1_ref, x0_ref, eta_ref, o_ref):
    """One grid step processes one (TM, CHW_pad) row-block.

    s0_ref / s1_ref : VMEM (TM, 1) f32       per-row sqrt(abar), sqrt(1-abar)
    x0_ref / eta_ref: VMEM (TM, CHW_pad)     clean image / noise (flat, padded)
    o_ref           : VMEM (TM, CHW_pad)     noisy output
    """
    noisy = s0_ref[...] * x0_ref[...] + s1_ref[...] * eta_ref[...]
    o_ref[...] = noisy.astype(o_ref.dtype)


def make_ddpm_schedule(n_steps=200, min_beta=1e-4, max_beta=0.02):
    """Deterministic parameter setup, mirroring MyDDPM.__init__."""
    betas = jnp.linspace(min_beta, max_beta, n_steps, dtype=jnp.float32)
    alphas = 1.0 - betas
    alpha_bars = jnp.cumprod(alphas)          # alpha_bars[i] = prod(alphas[:i+1])
    return betas, alphas, alpha_bars


def _round_up(x, m):
    return (x + m - 1) // m * m


def ddpm_forward(x0, t, eta, alpha_bars, *, target_block_bytes=2 * 1024 * 1024):
    """noisy = sqrt(abar[t]).reshape(n,1,1,1)*x0 + sqrt(1-abar[t]).reshape(n,1,1,1)*eta"""
    n, c, h, w = x0.shape
    chw = c * h * w
    chw_pad = _round_up(chw, 128)             # lane dim multiple of 128 -> dense vst

    # Per-sample scales computed once in the wrapper (length-n, negligible cost).
    a_bar = alpha_bars[t.astype(jnp.int32)].astype(jnp.float32)
    s0 = jnp.sqrt(a_bar)
    s1 = jnp.sqrt(1.0 - a_bar)

    # Rows per block: multiple of 8 (sublane-dense), sized to ~target_block_bytes
    # per operand (3 operands x 2 buffers stays well under scoped VMEM on all gens).
    itemsize = jnp.dtype(x0.dtype).itemsize
    bytes_per_row = chw_pad * itemsize
    rows = max(8, (target_block_bytes // bytes_per_row) // 8 * 8)
    rows = min(rows, _round_up(n, 8))         # don't over-allocate for small batches
    n_pad = _round_up(n, rows)

    x0_f = x0.reshape(n, chw)
    eta_f = eta.reshape(n, chw)
    if chw_pad != chw or n_pad != n:
        x0_f = jnp.pad(x0_f, ((0, n_pad - n), (0, chw_pad - chw)))
        eta_f = jnp.pad(eta_f, ((0, n_pad - n), (0, chw_pad - chw)))
    s0_2d = jnp.pad(s0, (0, n_pad - n)).reshape(n_pad, 1)
    s1_2d = jnp.pad(s1, (0, n_pad - n)).reshape(n_pad, 1)

    grid = (n_pad // rows,)
    out = pl.pallas_call(
        _ddpm_kernel,
        out_shape=jax.ShapeDtypeStruct((n_pad, chw_pad), x0.dtype),
        grid_spec=pltpu.PrefetchScalarGridSpec(
            num_scalar_prefetch=0,
            grid=grid,
            in_specs=[
                pl.BlockSpec((rows, 1), lambda i: (i, 0)),         # s0 per-row
                pl.BlockSpec((rows, 1), lambda i: (i, 0)),         # s1 per-row
                pl.BlockSpec((rows, chw_pad), lambda i: (i, 0)),   # x0
                pl.BlockSpec((rows, chw_pad), lambda i: (i, 0)),   # eta
            ],
            out_specs=pl.BlockSpec((rows, chw_pad), lambda i: (i, 0)),
        ),
        compiler_params=pltpu.CompilerParams(
            dimension_semantics=("parallel",)),
    )(s0_2d, s1_2d, x0_f, eta_f)

    return out[:n, :chw].reshape(n, c, h, w)


def _ref_forward(x0, t, eta, alpha_bars):
    n = x0.shape[0]
    a_bar = alpha_bars[t].reshape(n, 1, 1, 1)
    return jnp.sqrt(a_bar) * x0 + jnp.sqrt(1.0 - a_bar) * eta


if __name__ == "__main__":
    N_STEPS = 200
    _, _, alpha_bars = make_ddpm_schedule(n_steps=N_STEPS)

    key = jax.random.PRNGKey(0)

    # Case 1: small shapes consistent with the module's forward (n, c, h, w).
    N, C, H, W = 2, 4, 16, 16
    k_x, k_t, k_eta, key = *jax.random.split(key, 3), jax.random.split(key, 4)[3]
    x0 = jax.random.normal(k_x, (N, C, H, W), dtype=jnp.float32)
    t = jax.random.randint(k_t, (N,), 0, N_STEPS, dtype=jnp.int32)
    eta = jax.random.normal(k_eta, (N, C, H, W), dtype=jnp.float32)

    noisy = jax.block_until_ready(ddpm_forward(x0, t, eta, alpha_bars))
    ref = _ref_forward(x0, t, eta, alpha_bars)
    assert noisy.shape == (N, C, H, W)
    assert jnp.allclose(noisy, ref, atol=1e-6, rtol=1e-6)

    # Case 2: MNIST-like default image_chw=(1, 28, 28) -> exercises lane padding
    # (CHW = 784 -> padded to 896) and row padding (N = 2 -> 8).
    N2, C2, H2, W2 = 2, 1, 28, 28
    k_x2, k_t2, k_eta2 = jax.random.split(key, 3)
    x0_2 = jax.random.normal(k_x2, (N2, C2, H2, W2), dtype=jnp.float32)
    t_2 = jax.random.randint(k_t2, (N2,), 0, N_STEPS, dtype=jnp.int32)
    eta_2 = jax.random.normal(k_eta2, (N2, C2, H2, W2), dtype=jnp.float32)

    noisy_2 = jax.block_until_ready(ddpm_forward(x0_2, t_2, eta_2, alpha_bars))
    ref_2 = _ref_forward(x0_2, t_2, eta_2, alpha_bars)
    assert noisy_2.shape == (N2, C2, H2, W2)
    assert jnp.allclose(noisy_2, ref_2, atol=1e-6, rtol=1e-6)

    # TODO(synk): MyDDPM.backward delegates to an arbitrary `network(x, t)`
    # which is not defined by this module, so it is not implemented here.

    print("KERNEL_OK")
</pallas_src>

<mosaic_0001>
module attributes {stable_mosaic.version = 11 : i64} {
  func.func @_ddpm_kernel(%arg0: i32, %arg1: memref<8x1xf32, #tpu.memory_space<vmem>>, %arg2: memref<8x1xf32, #tpu.memory_space<vmem>>, %arg3: memref<8x1024xf32, #tpu.memory_space<vmem>>, %arg4: memref<8x1024xf32, #tpu.memory_space<vmem>>, %arg5: memref<8x1024xf32, #tpu.memory_space<vmem>>) attributes {dimension_semantics = [#tpu.dimension_semantics<parallel>], iteration_bounds = array<i64: 1>, scalar_prefetch = 0 : i64, scratch_operands = 0 : i64, tpu.core_type = #tpu.core_type<tc>, window_params = [{transform_indices = @transform_0, window_bounds = array<i64: 8, 1>}, {transform_indices = @transform_1, window_bounds = array<i64: 8, 1>}, {transform_indices = @transform_2, window_bounds = array<i64: 8, 1024>}, {transform_indices = @transform_3, window_bounds = array<i64: 8, 1024>}, {transform_indices = @transform_4, window_bounds = array<i64: 8, 1024>}]} {
    %c0 = arith.constant 0 : index
    %c0_0 = arith.constant 0 : index
    %0 = vector.load %arg1[%c0, %c0_0] : memref<8x1xf32, #tpu.memory_space<vmem>>, vector<8x1xf32>
    %c0_1 = arith.constant 0 : index
    %c0_2 = arith.constant 0 : index
    %1 = vector.load %arg3[%c0_1, %c0_2] : memref<8x1024xf32, #tpu.memory_space<vmem>>, vector<8x1024xf32>
    %2 = vector.broadcast %0 : vector<8x1xf32> to vector<8x1024xf32>
    %3 = arith.mulf %2, %1 : vector<8x1024xf32>
    %c0_3 = arith.constant 0 : index
    %c0_4 = arith.constant 0 : index
    %4 = vector.load %arg2[%c0_3, %c0_4] : memref<8x1xf32, #tpu.memory_space<vmem>>, vector<8x1xf32>
    %c0_5 = arith.constant 0 : index
    %c0_6 = arith.constant 0 : index
    %5 = vector.load %arg4[%c0_5, %c0_6] : memref<8x1024xf32, #tpu.memory_space<vmem>>, vector<8x1024xf32>
    %6 = vector.broadcast %4 : vector<8x1xf32> to vector<8x1024xf32>
    %7 = arith.mulf %6, %5 : vector<8x1024xf32>
    %8 = arith.addf %3, %7 : vector<8x1024xf32>
    %c0_7 = arith.constant 0 : index
    %c0_8 = arith.constant 0 : index
    %9 = vector.load %arg5[%c0_7, %c0_8] : memref<8x1024xf32, #tpu.memory_space<vmem>>, vector<8x1024xf32>
    tpu.vector_store %arg5[%c0_7, %c0_8], %8 {strides = array<i32>} : memref<8x1024xf32, #tpu.memory_space<vmem>>, vector<8x1024xf32>,
    return
  }
  func.func @transform_0(%arg0: i32) -> (i32, i32) {
    %c0_i32 = arith.constant 0 : i32
    %c0_i32_0 = arith.constant 0 : i32
    return %arg0, %c0_i32 : i32, i32
  }
  func.func @transform_1(%arg0: i32) -> (i32, i32) {
    %c0_i32 = arith.constant 0 : i32
    %c0_i32_0 = arith.constant 0 : i32
    return %arg0, %c0_i32 : i32, i32
  }
  func.func @transform_2(%arg0: i32) -> (i32, i32) {
    %c0_i32 = arith.constant 0 : i32
    %c0_i32_0 = arith.constant 0 : i32
    return %arg0, %c0_i32 : i32, i32
  }
  func.func @transform_3(%arg0: i32) -> (i32, i32) {
    %c0_i32 = arith.constant 0 : i32
    %c0_i32_0 = arith.constant 0 : i32
    return %arg0, %c0_i32 : i32, i32
  }
  func.func @transform_4(%arg0: i32) -> (i32, i32) {
    %c0_i32 = arith.constant 0 : i32
    %c0_i32_0 = arith.constant 0 : i32
    return %arg0, %c0_i32 : i32, i32
  }
}

</mosaic_0001>

<bundles_post_ra>
// kernel: tpu_custom_call.1
= control target key start
LH: loop header
LB: loop body
LE: loop exit
PB: predicated region body
PF: predicated region fallthrough
CT: control target
= control target key end

     0   :  { %9 = vsyncpa [#allocation3], 0  ;;  %s266_s0 = inlined_call_operand.vmem [shape: f32[8,1], index: 0, kind: input, shape index: {}]   ;;  %s267_s1 = inlined_call_operand.vmem [shape: f32[8,1], index: 1, kind: input, shape index: {}]   ;;  %s268_s2 = inlined_call_operand.hbm [shape: f32[8,1024], index: 2, kind: input, shape index: {}]   ;;  %s269_s3 = inlined_call_operand.hbm [shape: f32[8,1024], index: 3, kind: input, shape index: {}]   ;;  %s270_s4 = inlined_call_operand.hbm [shape: f32[8,1024], index: 4, kind: output, shape index: {}]  }
   0x1   :  { %10 = vsyncpa [#allocation6], 0 }
   0x2   :  { %11 = vsyncpa [#allocation4], 0  ;;  %s195_s15 = smov [#allocation2]   ;;  %s196_s17 = smov [#allocation5]  }
   0x3   :  { %s22_s16 = sshll.u32 %s195_s15, 4  ;;  %s32_s18 = sshll.u32 %s196_s17, 4  ;;  %s23_s16 = int_to_ptr.vmem [resolvable:$true] %s22_s16  ;;  %s33_s18 = int_to_ptr.vmem [resolvable:$true] %s32_s18 }
   0x4   :  { %s123_s21 = scalar_lea.hbm %s268_s2, 1024 }
   0x5   :  { %p124_p0 = scmp.ne.s32.totalorder %s268_s2, %s123_s21  ;;  %p127_p1 = scmp.lt.u32.totalorder %s123_s21, %s268_s2 }
   0x7   :  { %p129_p2 = pnand %p127_p1, %p124_p0 }
   0x9   :  { %132 = shalt.err (!%p129_p2)
}
   0xa   :  { %s133_s26 = scalar_lea.vmem %s23_s16, 1024  ;;  %p138_p4 = scmp.lt.s32.totalorder %s23_s16, %s23_s16 }
   0xb   :  { %p134_p3 = scmp.ne.s32.totalorder %s23_s16, %s133_s26  ;;  %p139_p5 = scmp.lt.s32.totalorder %s133_s26, %s133_s26 }
   0xd   :  { %p140_p6 = por %p139_p5, %p138_p4 }
   0xf   :  { %p141_p7 = pnand %p140_p6, %p134_p3 }
  0x11   :  { %144 = shalt.err (!%p141_p7)
}
  0x12   :  { %25 = dma.hbm_to_vmem [thread:$0]  %s268_s2, 1024, %s23_s16, [#allocation3]  }
  0x13   :  { %s145_s5 = scalar_lea.hbm %s269_s3, 1024 }
  0x14   :  { %p146_p8 = scmp.ne.s32.totalorder %s269_s3, %s145_s5  ;;  %p149_p9 = scmp.lt.u32.totalorder %s145_s5, %s269_s3 }
  0x16   :  { %p151_p10 = pnand %p149_p9, %p146_p8 }
  0x18   :  { %154 = shalt.err (!%p151_p10)
}
  0x19   :  { %s155_s10 = scalar_lea.vmem %s33_s18, 1024  ;;  %p160_p12 = scmp.lt.s32.totalorder %s33_s18, %s33_s18 }
  0x1a   :  { %p156_p11 = scmp.ne.s32.totalorder %s33_s18, %s155_s10  ;;  %p161_p13 = scmp.lt.s32.totalorder %s155_s10, %s155_s10 }
  0x1c   :  { %p162_p0 = por %p161_p13, %p160_p12 }
  0x1e   :  { %p163_p1 = pnand %p162_p0, %p156_p11 }
  0x20   :  { %166 = shalt.err (!%p163_p1)
}
  0x21   :  { %35 = dma.hbm_to_vmem [thread:$0]  %s269_s3, 1024, %s33_s18, [#allocation6]  }
  0x22   :  { %189 = dma.done.wait [#allocation3], 1024  }
  0x23   :  { %190 = vsyncadd [#allocation3], 4294966272 }
  0x24   :  { %191 = dma.done.wait [#allocation6], 1024  }
  0x25   :  { %192 = vsyncadd [#allocation6], 4294966272  ;;  %v197_v0 = vmov 0   ;;  %v42_v1 = vld [vmem:[%s266_s0] sm:$0xff]  ;;  %v43_v3 = vld [vmem:[#allocation2] sm:$0xff]  ;;  %s198_s0 = smov [#allocation7]  }
  0x26   :  { %122 = vset.pattern.permute.xlu0 %v197_v0  ;;  %v64_v2 = vld [vmem:[%s267_s1] sm:$0xff]  ;;  %v44_v4 = vld [vmem:[#allocation2 + $0x8] sm:$0xff]  ;;  %v45_v5 = vld [vmem:[#allocation2 + $0x10] sm:$0xff]  ;;  %s108_s1 = sshll.u32 %s198_s0, 4  ;;  %s109_s1 = int_to_ptr.vmem [resolvable:$true] %s108_s1 }
  0x27   :  { %53 = vperm.xlu0 %122, %v42_v1   ;;  %v46_v6 = vld [vmem:[#allocation2 + $0x18] sm:$0xff]  ;;  %v47_v8 = vld [vmem:[#allocation2 + $0x20] sm:$0xff]  ;;  %v48_v9 = vld [vmem:[#allocation2 + $0x28] sm:$0xff]  ;;  %s167_s3 = scalar_lea.vmem %s109_s1, 1024  ;;  %p172_p3 = scmp.lt.s32.totalorder %s109_s1, %s109_s1 }
  0x28   :  { %v49_v10 = vld [vmem:[#allocation2 + $0x30] sm:$0xff]  ;;  %v50_v11 = vld [vmem:[#allocation2 + $0x38] sm:$0xff]  ;;  %v65_v12 = vld [vmem:[#allocation5] sm:$0xff]  ;;  %p168_p2 = scmp.ne.s32.totalorder %s109_s1, %s167_s3  ;;  %p173_p4 = scmp.lt.s32.totalorder %s167_s3, %s167_s3 }
  0x29   :  { %v66_v13 = vld [vmem:[#allocation5 + $0x8] sm:$0xff]  ;;  %v67_v14 = vld [vmem:[#allocation5 + $0x10] sm:$0xff]  ;;  %v68_v15 = vld [vmem:[#allocation5 + $0x18] sm:$0xff] }
  0x2a   :  { %v69_v16 = vld [vmem:[#allocation5 + $0x20] sm:$0xff]  ;;  %v70_v21 = vld [vmem:[#allocation5 + $0x28] sm:$0xff]  ;;  %v71_v22 = vld [vmem:[#allocation5 + $0x30] sm:$0xff]  ;;  %p174_p5 = por %p173_p4, %p172_p3 }
  0x2b   :  { %75 = vperm.xlu0 %122, %v64_v2   ;;  %v72_v23 = vld [vmem:[#allocation5 + $0x38] sm:$0xff] }
  0x2c   :  { %p175_p6 = pnand %p174_p5, %p168_p2 }
  0xa6   :  { %v54_v7 = vpop.permute.xlu0 %53 }
  0xa7   :  { %v56_v17 = vmul.f32 %v54_v7, %v43_v3  ;;  %v57_v18 = vmul.f32 %v54_v7, %v44_v4  ;;  %v58_v19 = vmul.f32 %v54_v7, %v45_v5  ;;  %v59_v20 = vmul.f32 %v54_v7, %v46_v6 }
  0xa8   :  { %v60_v24 = vmul.f32 %v54_v7, %v47_v8  ;;  %v61_v25 = vmul.f32 %v54_v7, %v48_v9  ;;  %v62_v26 = vmul.f32 %v54_v7, %v49_v10  ;;  %v63_v27 = vmul.f32 %v54_v7, %v50_v11 }
  0xaa   :  { %v76_v28 = vpop.permute.xlu0 %75 }
  0xab   :  { %v78_v29 = vmul.f32 %v76_v28, %v65_v12  ;;  %v79_v30 = vmul.f32 %v76_v28, %v66_v13  ;;  %v80_v31 = vmul.f32 %v76_v28, %v67_v14  ;;  %v81_v32 = vmul.f32 %v76_v28, %v68_v15 }
  0xac   :  { %v82_v33 = vmul.f32 %v76_v28, %v69_v16  ;;  %v83_v34 = vmul.f32 %v76_v28, %v70_v21  ;;  %v84_v35 = vmul.f32 %v76_v28, %v71_v22  ;;  %v85_v36 = vmul.f32 %v76_v28, %v72_v23 }
  0xad   :  { %v86_v37 = vadd.f32 %v78_v29, %v56_v17  ;;  %v87_v38 = vadd.f32 %v79_v30, %v57_v18  ;;  %v88_v39 = vadd.f32 %v80_v31, %v58_v19  ;;  %v89_v40 = vadd.f32 %v81_v32, %v59_v20 }
  0xae   :  { %v90_v41 = vadd.f32 %v82_v33, %v60_v24  ;;  %v91_v42 = vadd.f32 %v83_v34, %v61_v25  ;;  %v92_v43 = vadd.f32 %v84_v35, %v62_v26  ;;  %v93_v44 = vadd.f32 %v85_v36, %v63_v27 }
  0xaf   :  { %94 = vst [vmem:[#allocation7] sm:$0xff] %v86_v37  ;;  %95 = vst [vmem:[#allocation7 + $0x8] sm:$0xff] %v87_v38 }
  0xb0   :  { %96 = vst [vmem:[#allocation7 + $0x10] sm:$0xff] %v88_v39  ;;  %97 = vst [vmem:[#allocation7 + $0x18] sm:$0xff] %v89_v40 }
  0xb1   :  { %98 = vst [vmem:[#allocation7 + $0x20] sm:$0xff] %v90_v41  ;;  %99 = vst [vmem:[#allocation7 + $0x28] sm:$0xff] %v91_v42 }
  0xb2   :  { %100 = vst [vmem:[#allocation7 + $0x30] sm:$0xff] %v92_v43  ;;  %101 = vst [vmem:[#allocation7 + $0x38] sm:$0xff] %v93_v44 }
  0xb3   :  { %178 = shalt.err (!%p175_p6)
}
  0xb4   :  { %s179_s18 = scalar_lea.hbm %s270_s4, 1024 }
  0xb5   :  { %p180_p7 = scmp.ne.s32.totalorder %s270_s4, %s179_s18  ;;  %p183_p8 = scmp.lt.u32.totalorder %s179_s18, %s270_s4 }
  0xb7   :  { %p185_p9 = pnand %p183_p8, %p180_p7 }
  0xb9   :  { %188 = shalt.err (!%p185_p9)
}
  0xba   :  { %111 = dma.vmem_to_hbm [thread:$0]  %s109_s1, 1024, %s270_s4, [#allocation4]  }
  0xbb   :  { %193 = dma.done.wait [#allocation4], 1024  }
  0xbc   :  { %194 = vsyncadd [#allocation4], 4294966272 }
  0xbd   :  { %115 = vsyncpa [#allocation3], 1 }
  0xbe   :  { %116 = vsyncpa [#allocation6], 1 }
  0xbf   :  { %117 = vsyncpa [#allocation4], 1 }

</bundles_post_ra>
